<compile_context>
chip_gen: v7x
topology: tpu7x:2x2x1
jax: 0.10.0
libtpu: 0.0.40
codegen_flags: <defaults>
</compile_context>

<pallas_src>
import math

import jax
import jax.numpy as jnp
from jax.experimental import pallas as pl
from jax.experimental.pallas import tpu as pltpu

LANE = 128      # vreg lane width
SUBLANE = 8     # vreg sublane count (f32)


# ----------------------------- Pallas kernel --------------------------------
def _mlp_kernel(d1_ref, d2_ref,
                w0a_ref, w0b_ref, b0_ref,
                w1_ref, b1_ref,
                w2_ref, b2_ref,
                o_ref):
    """Fused 3-layer MLP with the input concat folded into the first layer.

        h0 = relu(d1 @ W0a + d2 @ W0b + b0)   (== relu(cat(d1,d2) @ W0 + b0))
        h1 = relu(h0 @ W1 + b1)
        o  = h1 @ W2 + b2                      (W2/b2 lane-padded to 128 cols)

    Dropout(p=0.0) / eval mode -> identity, nothing to emit.
    """
    # TODO(synk): training-mode dropout (p>0) would need pltpu.prng_seed /
    #             pltpu.prng_random_bits masking; p=0.0 / eval => identity.
    cdt = w1_ref.dtype  # bf16 compute dtype; MXU accumulates in f32.

    h = (jnp.dot(d1_ref[...], w0a_ref[...], preferred_element_type=jnp.float32)
         + jnp.dot(d2_ref[...], w0b_ref[...], preferred_element_type=jnp.float32)
         + b0_ref[...])
    h = jnp.maximum(h, 0.0)                                       # ReLU

    h = (jnp.dot(h.astype(cdt), w1_ref[...], preferred_element_type=jnp.float32)
         + b1_ref[...])
    h = jnp.maximum(h, 0.0)                                       # ReLU

    o_ref[...] = (jnp.dot(h.astype(cdt), w2_ref[...],
                          preferred_element_type=jnp.float32)
                  + b2_ref[...]).astype(o_ref.dtype)


# --------------------------------- wrapper -----------------------------------
def side_effect_dnn_predictor(drug_embedding1, drug_embedding2, params,
                              *, batch_tile=512, compute_dtype=jnp.bfloat16):
    """Concat-free, batch-tiled, bf16-operand fused MLP."""
    (w0, b0), (w1, b1), (w2, b2) = params
    B, in_feats = drug_embedding1.shape
    h0, h1, out_dim = w0.shape[1], w1.shape[1], w2.shape[1]

    # --- fold the concat into the kernel: split W0 across the two inputs ----
    w0a, w0b = w0[:in_feats], w0[in_feats:]

    # --- lane-pad the final layer to a multiple of 128 (dense vst) ----------
    out_dim_p = pl.cdiv(out_dim, LANE) * LANE
    w2p = jnp.pad(w2, ((0, 0), (0, out_dim_p - out_dim)))
    b2p = jnp.pad(b2, ((0, 0), (0, out_dim_p - out_dim)))

    # --- batch tiling: pipeline over batch, weights stay VMEM-resident ------
    TB = max(SUBLANE, min(batch_tile, pl.cdiv(B, SUBLANE) * SUBLANE))
    TB = (TB // SUBLANE) * SUBLANE
    Bp = pl.cdiv(B, TB) * TB
    if Bp != B:
        pad = ((0, Bp - B), (0, 0))
        drug_embedding1 = jnp.pad(drug_embedding1, pad)
        drug_embedding2 = jnp.pad(drug_embedding2, pad)
    grid = (Bp // TB,)

    # --- bf16 operands, f32 MXU accumulation (biases stay f32) --------------
    cast = lambda a: a.astype(compute_dtype)
    d1c, d2c = cast(drug_embedding1), cast(drug_embedding2)
    w0a_c, w0b_c, w1c, w2c = cast(w0a), cast(w0b), cast(w1), cast(w2p)
    b0f = b0.astype(jnp.float32)
    b1f = b1.astype(jnp.float32)
    b2f = b2p.astype(jnp.float32)

    tile = lambda shape: pl.BlockSpec(shape, lambda i: (i, 0))    # batch-tiled
    whole = lambda shape: pl.BlockSpec(shape, lambda i: (0, 0))   # VMEM-resident

    flops = 2 * Bp * (2 * in_feats * h0 + h0 * h1 + h1 * out_dim_p)
    bytes_accessed = (
        d1c.size * d1c.dtype.itemsize + d2c.size * d2c.dtype.itemsize
        + sum(a.size * a.dtype.itemsize
              for a in (w0a_c, w0b_c, w1c, w2c, b0f, b1f, b2f))
        + Bp * out_dim_p * 4)

    out = pl.pallas_call(
        _mlp_kernel,
        out_shape=jax.ShapeDtypeStruct((Bp, out_dim_p), jnp.float32),
        grid=grid,
        in_specs=[
            tile((TB, in_feats)), tile((TB, in_feats)),
            whole(w0a_c.shape), whole(w0b_c.shape), whole(b0f.shape),
            whole(w1c.shape), whole(b1f.shape),
            whole(w2c.shape), whole(b2f.shape),
        ],
        out_specs=tile((TB, out_dim_p)),
        compiler_params=pltpu.CompilerParams(
            dimension_semantics=("parallel",)),   # shards batch tiles on v7x's 2 TCs
        cost_estimate=pl.CostEstimate(flops=flops, transcendentals=0,
                                      bytes_accessed=bytes_accessed),
    )(d1c, d2c, w0a_c, w0b_c, b0f, w1c, b1f, w2c, b2f)

    # strip batch / lane padding
    return out[:B, :out_dim]


# -------------------------- parameter construction --------------------------
def init_linear(key, fan_in, fan_out):
    """Deterministic init matching torch.nn.Linear's default (uniform +-1/sqrt(fan_in))."""
    kw, kb = jax.random.split(key)
    bound = 1.0 / math.sqrt(fan_in)
    w = jax.random.uniform(kw, (fan_in, fan_out), jnp.float32, -bound, bound)
    b = jax.random.uniform(kb, (1, fan_out), jnp.float32, -bound, bound)
    return w, b


def make_params(key, in_feats, layer_list):
    params = []
    dims = [in_feats * 2] + list(layer_list)
    for i in range(len(layer_list)):
        key, sub = jax.random.split(key)
        params.append(init_linear(sub, dims[i], dims[i + 1]))
    return params


# pure-JAX reference mirroring the kernel's bf16-operand / f32-accumulate math
def reference(d1, d2, params, compute_dtype=jnp.bfloat16):
    x = jnp.concatenate([d1, d2], axis=1).astype(compute_dtype)
    n = len(params)
    for i, (w, b) in enumerate(params):
        x = jnp.dot(x, w.astype(compute_dtype),
                    preferred_element_type=jnp.float32) + b
        if i != n - 1:
            x = jnp.maximum(x, 0.0).astype(compute_dtype)
    return x


# ----------------------------------- main ------------------------------------
if __name__ == "__main__":
    in_feats = 32
    layer_list = [64, 32, 16]   # Linear+ReLU, Linear+ReLU, Linear
    batch = 8

    key = jax.random.PRNGKey(0)
    k1, k2, kp = jax.random.split(key, 3)
    drug_embedding1 = jax.random.normal(k1, (batch, in_feats), jnp.float32)
    drug_embedding2 = jax.random.normal(k2, (batch, in_feats), jnp.float32)
    params = make_params(kp, in_feats, layer_list)

    out = side_effect_dnn_predictor(drug_embedding1, drug_embedding2, params)
    out = jax.block_until_ready(out)

    ref = reference(drug_embedding1, drug_embedding2, params)
    assert out.shape == (batch, layer_list[-1])
    assert jnp.allclose(out, ref, atol=1e-2, rtol=1e-2), "mismatch vs reference"

    print("KERNEL_OK")
</pallas_src>

<mosaic_0001>
module attributes {stable_mosaic.version = 11 : i64} {
  func.func @_mlp_kernel(%arg0: i32, %arg1: memref<8x32xbf16, #tpu.memory_space<vmem>>, %arg2: memref<8x32xbf16, #tpu.memory_space<vmem>>, %arg3: memref<32x64xbf16, #tpu.memory_space<vmem>>, %arg4: memref<32x64xbf16, #tpu.memory_space<vmem>>, %arg5: memref<1x64xf32, #tpu.memory_space<vmem>>, %arg6: memref<64x32xbf16, #tpu.memory_space<vmem>>, %arg7: memref<1x32xf32, #tpu.memory_space<vmem>>, %arg8: memref<32x128xbf16, #tpu.memory_space<vmem>>, %arg9: memref<1x128xf32, #tpu.memory_space<vmem>>, %arg10: memref<8x128xf32, #tpu.memory_space<vmem>>) attributes {dimension_semantics = [#tpu.dimension_semantics<parallel>], iteration_bounds = array<i64: 1>, scalar_prefetch = 0 : i64, scratch_operands = 0 : i64, tpu.core_type = #tpu.core_type<tc>, window_params = [{transform_indices = @transform_0, window_bounds = array<i64: 8, 32>}, {transform_indices = @transform_1, window_bounds = array<i64: 8, 32>}, {pipeline_mode = #tpu.pipeline_mode<synchronous>, transform_indices = @transform_2, window_bounds = array<i64: 32, 64>}, {pipeline_mode = #tpu.pipeline_mode<synchronous>, transform_indices = @transform_3, window_bounds = array<i64: 32, 64>}, {pipeline_mode = #tpu.pipeline_mode<synchronous>, transform_indices = @transform_4, window_bounds = array<i64: 1, 64>}, {pipeline_mode = #tpu.pipeline_mode<synchronous>, transform_indices = @transform_5, window_bounds = array<i64: 64, 32>}, {pipeline_mode = #tpu.pipeline_mode<synchronous>, transform_indices = @transform_6, window_bounds = array<i64: 1, 32>}, {pipeline_mode = #tpu.pipeline_mode<synchronous>, transform_indices = @transform_7, window_bounds = array<i64: 32, 128>}, {pipeline_mode = #tpu.pipeline_mode<synchronous>, transform_indices = @transform_8, window_bounds = array<i64: 1, 128>}, {transform_indices = @transform_9, window_bounds = array<i64: 8, 128>}]} {
    %c0 = arith.constant 0 : index
    %c0_0 = arith.constant 0 : index
    %0 = vector.load %arg1[%c0, %c0_0] : memref<8x32xbf16, #tpu.memory_space<vmem>>, vector<8x32xbf16>
    %c0_1 = arith.constant 0 : index
    %c0_2 = arith.constant 0 : index
    %1 = vector.load %arg3[%c0_1, %c0_2] : memref<32x64xbf16, #tpu.memory_space<vmem>>, vector<32x64xbf16>
    %cst = arith.constant dense<0.000000e+00> : vector<8x64xf32>
    %2 = tpu.matmul %0, %1, %cst {dimension_numbers = #tpu.dot_dimension_numbers<[1], [0], [0], [1], [0, 0, 1, 1], [], []>} : vector<8x32xbf16>, vector<32x64xbf16>, vector<8x64xf32> -> vector<8x64xf32>
    %c0_3 = arith.constant 0 : index
    %c0_4 = arith.constant 0 : index
    %3 = vector.load %arg2[%c0_3, %c0_4] : memref<8x32xbf16, #tpu.memory_space<vmem>>, vector<8x32xbf16>
    %c0_5 = arith.constant 0 : index
    %c0_6 = arith.constant 0 : index
    %4 = vector.load %arg4[%c0_5, %c0_6] : memref<32x64xbf16, #tpu.memory_space<vmem>>, vector<32x64xbf16>
    %cst_7 = arith.constant dense<0.000000e+00> : vector<8x64xf32>
    %5 = tpu.matmul %3, %4, %cst_7 {dimension_numbers = #tpu.dot_dimension_numbers<[1], [0], [0], [1], [0, 0, 1, 1], [], []>} : vector<8x32xbf16>, vector<32x64xbf16>, vector<8x64xf32> -> vector<8x64xf32>
    %6 = arith.addf %2, %5 : vector<8x64xf32>
    %c0_8 = arith.constant 0 : index
    %c0_9 = arith.constant 0 : index
    %7 = vector.load %arg5[%c0_8, %c0_9] : memref<1x64xf32, #tpu.memory_space<vmem>>, vector<1x64xf32>
    %8 = vector.broadcast %7 : vector<1x64xf32> to vector<8x64xf32>
    %9 = arith.addf %6, %8 : vector<8x64xf32>
    %cst_10 = arith.constant 0.000000e+00 : f32
    %10 = vector.broadcast %cst_10 : f32 to vector<8x64xf32>
    %11 = arith.maximumf %9, %10 : vector<8x64xf32>
    %12 = arith.truncf %11 : vector<8x64xf32> to vector<8x64xbf16>
    %c0_11 = arith.constant 0 : index
    %c0_12 = arith.constant 0 : index
    %13 = vector.load %arg6[%c0_11, %c0_12] : memref<64x32xbf16, #tpu.memory_space<vmem>>, vector<64x32xbf16>
    %cst_13 = arith.constant dense<0.000000e+00> : vector<8x32xf32>
    %14 = tpu.matmul %12, %13, %cst_13 {dimension_numbers = #tpu.dot_dimension_numbers<[1], [0], [0], [1], [0, 0, 1, 1], [], []>} : vector<8x64xbf16>, vector<64x32xbf16>, vector<8x32xf32> -> vector<8x32xf32>
    %c0_14 = arith.constant 0 : index
    %c0_15 = arith.constant 0 : index
    %15 = vector.load %arg7[%c0_14, %c0_15] : memref<1x32xf32, #tpu.memory_space<vmem>>, vector<1x32xf32>
    %16 = vector.broadcast %15 : vector<1x32xf32> to vector<8x32xf32>
    %17 = arith.addf %14, %16 : vector<8x32xf32>
    %cst_16 = arith.constant 0.000000e+00 : f32
    %18 = vector.broadcast %cst_16 : f32 to vector<8x32xf32>
    %19 = arith.maximumf %17, %18 : vector<8x32xf32>
    %20 = arith.truncf %19 : vector<8x32xf32> to vector<8x32xbf16>
    %c0_17 = arith.constant 0 : index
    %c0_18 = arith.constant 0 : index
    %21 = vector.load %arg8[%c0_17, %c0_18] : memref<32x128xbf16, #tpu.memory_space<vmem>>, vector<32x128xbf16>
    %cst_19 = arith.constant dense<0.000000e+00> : vector<8x128xf32>
    %22 = tpu.matmul %20, %21, %cst_19 {dimension_numbers = #tpu.dot_dimension_numbers<[1], [0], [0], [1], [0, 0, 1, 1], [], []>} : vector<8x32xbf16>, vector<32x128xbf16>, vector<8x128xf32> -> vector<8x128xf32>
    %c0_20 = arith.constant 0 : index
    %c0_21 = arith.constant 0 : index
    %23 = vector.load %arg9[%c0_20, %c0_21] : memref<1x128xf32, #tpu.memory_space<vmem>>, vector<1x128xf32>
    %24 = vector.broadcast %23 : vector<1x128xf32> to vector<8x128xf32>
    %25 = arith.addf %22, %24 : vector<8x128xf32>
    %c0_22 = arith.constant 0 : index
    %c0_23 = arith.constant 0 : index
    %26 = vector.load %arg10[%c0_22, %c0_23] : memref<8x128xf32, #tpu.memory_space<vmem>>, vector<8x128xf32>
    tpu.vector_store %arg10[%c0_22, %c0_23], %25 {strides = array<i32>} : memref<8x128xf32, #tpu.memory_space<vmem>>, vector<8x128xf32>,
    return
  }
  func.func @transform_0(%arg0: i32) -> (i32, i32) {
    %c0_i32 = arith.constant 0 : i32
    %c0_i32_0 = arith.constant 0 : i32
    return %arg0, %c0_i32 : i32, i32
  }
  func.func @transform_1(%arg0: i32) -> (i32, i32) {
    %c0_i32 = arith.constant 0 : i32
    %c0_i32_0 = arith.constant 0 : i32
    return %arg0, %c0_i32 : i32, i32
  }
  func.func @transform_2(%arg0: i32) -> (i32, i32) {
    %c0_i32 = arith.constant 0 : i32
    %c0_i32_0 = arith.constant 0 : i32
    %c0_i32_1 = arith.constant 0 : i32
    return %c0_i32, %c0_i32_0 : i32, i32
  }
  func.func @transform_3(%arg0: i32) -> (i32, i32) {
    %c0_i32 = arith.constant 0 : i32
    %c0_i32_0 = arith.constant 0 : i32
    %c0_i32_1 = arith.constant 0 : i32
    return %c0_i32, %c0_i32_0 : i32, i32
  }
  func.func @transform_4(%arg0: i32) -> (i32, i32) {
    %c0_i32 = arith.constant 0 : i32
    %c0_i32_0 = arith.constant 0 : i32
    %c0_i32_1 = arith.constant 0 : i32
    return %c0_i32, %c0_i32_0 : i32, i32
  }
  func.func @transform_5(%arg0: i32) -> (i32, i32) {
    %c0_i32 = arith.constant 0 : i32
    %c0_i32_0 = arith.constant 0 : i32
    %c0_i32_1 = arith.constant 0 : i32
    return %c0_i32, %c0_i32_0 : i32, i32
  }
  func.func @transform_6(%arg0: i32) -> (i32, i32) {
    %c0_i32 = arith.constant 0 : i32
    %c0_i32_0 = arith.constant 0 : i32
    %c0_i32_1 = arith.constant 0 : i32
    return %c0_i32, %c0_i32_0 : i32, i32
  }
  func.func @transform_7(%arg0: i32) -> (i32, i32) {
    %c0_i32 = arith.constant 0 : i32
    %c0_i32_0 = arith.constant 0 : i32
    %c0_i32_1 = arith.constant 0 : i32
    return %c0_i32, %c0_i32_0 : i32, i32
  }
  func.func @transform_8(%arg0: i32) -> (i32, i32) {
    %c0_i32 = arith.constant 0 : i32
    %c0_i32_0 = arith.constant 0 : i32
    %c0_i32_1 = arith.constant 0 : i32
    return %c0_i32, %c0_i32_0 : i32, i32
  }
  func.func @transform_9(%arg0: i32) -> (i32, i32) {
    %c0_i32 = arith.constant 0 : i32
    %c0_i32_0 = arith.constant 0 : i32
    return %arg0, %c0_i32 : i32, i32
  }
}

</mosaic_0001>

<bundles_post_ra>
// kernel: tpu_custom_call.1
= control target key start
LH: loop header
LB: loop body
LE: loop exit
PB: predicated region body
PF: predicated region fallthrough
CT: control target
= control target key end

     0   :  { %14 = vsyncpa [#allocation3], 0  ;;  %s648_s0 = inlined_call_operand.hbm [shape: bf16[8,32], index: 0, kind: input, shape index: {}]   ;;  %s649_s1 = inlined_call_operand.hbm [shape: bf16[8,32], index: 1, kind: input, shape index: {}]   ;;  %s650_s2 = inlined_call_operand.vmem [shape: bf16[32,64], index: 2, kind: input, shape index: {}]   ;;  %s651_s3 = inlined_call_operand.vmem [shape: bf16[32,64], index: 3, kind: input, shape index: {}]   ;;  %s652_s4 = inlined_call_operand.vmem [shape: f32[1,64], index: 4, kind: input, shape index: {}]   ;;  %s653_s5 = inlined_call_operand.vmem [shape: bf16[64,32], index: 5, kind: input, shape index: {}]   ;;  %s654_s6 = inlined_call_operand.vmem [shape: f32[1,32], index: 6, kind: input, shape index: {}]   ;;  %s655_s7 = inlined_call_operand.vmem [shape: bf16[32,128], index: 7, kind: input, shape index: {}]   ;;  %s656_s8 = inlined_call_operand.vmem [shape: f32[1,128], index: 8, kind: input, shape index: {}]   ;;  %s657_s9 = inlined_call_operand.hbm [shape: f32[8,128], index: 9, kind: output, shape index: {}]  }
   0x1   :  { %15 = vsyncpa [#allocation6], 0 }
   0x2   :  { %16 = vsyncpa [#allocation4], 0  ;;  %s511_s30 = smov [#allocation2]   ;;  %s512_s11 = smov [#allocation5]  }
   0x3   :  { %s23_s10 = sshll.u32 %s511_s30, 4  ;;  %s33_s12 = sshll.u32 %s512_s11, 4  ;;  %s24_s10 = int_to_ptr.vmem [resolvable:$true] %s23_s10  ;;  %s34_s12 = int_to_ptr.vmem [resolvable:$true] %s33_s12 }
   0x4   :  { %s439_s15 = scalar_lea.hbm %s648_s0, 64 }
   0x5   :  { %p440_p0 = scmp.ne.s32.totalorder %s648_s0, %s439_s15  ;;  %p443_p1 = scmp.lt.u32.totalorder %s439_s15, %s648_s0 }
   0x7   :  { %p445_p2 = pnand %p443_p1, %p440_p0 }
   0x9   :  { %448 = shalt.err (!%p445_p2)
}
   0xa   :  { %s449_s20 = scalar_lea.vmem %s24_s10, 64  ;;  %p454_p4 = scmp.lt.s32.totalorder %s24_s10, %s24_s10 }
   0xb   :  { %p450_p3 = scmp.ne.s32.totalorder %s24_s10, %s449_s20  ;;  %p455_p5 = scmp.lt.s32.totalorder %s449_s20, %s449_s20 }
   0xd   :  { %p456_p6 = por %p455_p5, %p454_p4 }
   0xf   :  { %p457_p7 = pnand %p456_p6, %p450_p3 }
  0x11   :  { %460 = shalt.err (!%p457_p7)
}
  0x12   :  { %26 = dma.hbm_to_vmem [thread:$0]  %s648_s0, 64, %s24_s10, [#allocation3]  }
  0x13   :  { %s461_s25 = scalar_lea.hbm %s649_s1, 64 }
  0x14   :  { %p462_p8 = scmp.ne.s32.totalorder %s649_s1, %s461_s25  ;;  %p465_p9 = scmp.lt.u32.totalorder %s461_s25, %s649_s1 }
  0x16   :  { %p467_p10 = pnand %p465_p9, %p462_p8 }
  0x18   :  { %470 = shalt.err (!%p467_p10)
}
  0x19   :  { %s471_s30 = scalar_lea.vmem %s34_s12, 64  ;;  %p476_p12 = scmp.lt.s32.totalorder %s34_s12, %s34_s12 }
  0x1a   :  { %p472_p11 = scmp.ne.s32.totalorder %s34_s12, %s471_s30  ;;  %p477_p13 = scmp.lt.s32.totalorder %s471_s30, %s471_s30 }
  0x1c   :  { %p478_p0 = por %p477_p13, %p476_p12 }
  0x1e   :  { %p479_p1 = pnand %p478_p0, %p472_p11 }
  0x20   :  { %482 = shalt.err (!%p479_p1)
}
  0x21   :  { %36 = dma.hbm_to_vmem [thread:$0]  %s649_s1, 64, %s34_s12, [#allocation6]  }
  0x22   :  { %505 = dma.done.wait [#allocation3], 64  }
  0x23   :  { %506 = vsyncadd [#allocation3], 4294967232 }
  0x24   :  { %507 = dma.done.wait [#allocation6], 64  }
  0x25   :  { %508 = vsyncadd [#allocation6], 4294967232  ;;  %v513_v0 = vmov 0.0   ;;  %vm514_vm0 = vmmov 0   ;;  %v429_v1 = vld [vmem:[%s651_s3] sm:$0xff]   ;;  %v431_v3 = vld [vmem:[%s651_s3 + $0x8] sm:$0xff]  }
  0x26   :  { %388 = vmatprep.subr.bf16.mxu0 %v513_v0  ;;  %396 = vmatprep.subr.bf16.mxu1 %v513_v0  ;;  %v430_v2 = vld [vmem:[%s650_s2] sm:$0xff]   ;;  %v432_v4 = vld [vmem:[%s650_s2 + $0x8] sm:$0xff]   ;;  %vm80_vm1 = vcmask 261120   ;;  %v435_v9 = vld [vmem:[%s653_s5 + $0x10] sm:$0xff]   ;;  %vm228_vm2 = vcmask 523264   ;;  %s515_s10 = smov [#allocation7]  }
  0x27   :  { %392 = vmatprep.mubr.msk.bf16.mxu0 %vm514_vm0, %v513_v0  ;;  %400 = vmatprep.mubr.msk.bf16.mxu1 %vm514_vm0, %v513_v0  ;;  %v63_v5 = vld [vmem:[#allocation5] sm:$0xf]  ;;  %v58_v6 = vld [vmem:[#allocation2] sm:$0xf]  ;;  %v434_v8 = vld [vmem:[%s653_s5 + $0x8] sm:$0xff]  }
  0x28   :  { %389 = vmatpush3.bf16.msra.mxu0 %v429_v1  ;;  %397 = vmatpush3.bf16.msra.mxu1 %v430_v2  ;;  %v433_v7 = vld [vmem:[%s653_s5] sm:$0xff]   ;;  %v436_v10 = vld [vmem:[%s653_s5 + $0x18] sm:$0xff]   ;;  %v438_v25 = vld [vmem:[%s655_s7 + $0x8] sm:$0xff]  }
  0x29   :  { %390 = vmatprep.subr.bf16.mxu0 %v513_v0  ;;  %398 = vmatprep.subr.bf16.mxu1 %v513_v0  ;;  %v437_v11 = vld [vmem:[%s655_s7] sm:$0xff]   ;;  %s347_s7 = sshll.u32 %s515_s10, 4  ;;  %s348_s7 = int_to_ptr.vmem [resolvable:$true] %s347_s7 }
  0x2a   :  { %v363_v14 = vld [vmem:[%s652_s4] ss:$0 sm:$0xff]  ;;  %p488_p3 = scmp.lt.s32.totalorder %s348_s7, %s348_s7 }
  0x2b   :  { %v364_v26 = vld [vmem:[%s654_s6] ss:$0 sm:$0xff]  ;;  %s483_s6 = scalar_lea.vmem %s348_s7, 128 }
  0x2c   :  { %391 = vmatpush3.bf16.msra.mxu0 %v431_v3  ;;  %399 = vmatpush3.bf16.msra.mxu1 %v432_v4  ;;  %v370_v34 = vld [vmem:[%s656_s8] ss:$0 sm:$0xff]  ;;  %p484_p2 = scmp.ne.s32.totalorder %s348_s7, %s483_s6  ;;  %p489_p4 = scmp.lt.s32.totalorder %s483_s6, %s483_s6 }
  0x2d   :  { %404 = vmatprep.subr.bf16.mxu0 %v513_v0  ;;  %416 = vmatprep.subr.bf16.mxu1 %v513_v0 }
  0x2e   :  { %p490_p5 = por %p489_p4, %p488_p3 }
  0x2f   :  { %393 = vmatmul.mubr.msk.bf16.vlgmr.msra.gmra.mrb[0].mxu0 %vm80_vm1, %v63_v5  ;;  %401 = vmatmul.mubr.msk.bf16.vlgmr.msra.gmra.mrb[0].mxu1 %vm80_vm1, %v58_v6 }
  0x30   :  { %405 = vmatpush3.bf16.msra.mxu0 %v433_v7  ;;  %412 = vmatprep.mubr.msk.bf16.mxu0 %vm514_vm0, %v513_v0  ;;  %p491_p6 = pnand %p490_p5, %p484_p2 }
  0x31   :  { %406 = vmatprep.subr.bf16.mxu0 %v513_v0  ;;  %420 = vmatprep.mubr.msk.bf16.mxu1 %vm514_vm0, %v513_v0 }
  0x32   :  { %417 = vmatpush3.bf16.msra.mxu1 %v437_v11 }
  0x33   :  { %418 = vmatprep.subr.bf16.mxu1 %v513_v0 }
  0x34   :  { %407 = vmatpush3.bf16.msra.mxu0 %v434_v8 }
  0x35   :  { %408 = vmatprep.subr.bf16.mxu0 %v513_v0 }
  0x36   :  { %419 = vmatpush3.bf16.msra.mxu1 %v438_v25 }
  0x38   :  { %409 = vmatpush3.bf16.msra.mxu0 %v435_v9 }
  0x39   :  { %410 = vmatprep.subr.bf16.mxu0 %v513_v0 }
  0x3c   :  { %411 = vmatpush3.bf16.msra.mxu0 %v436_v10 }
 0x102   :  { %v118_v12 = vpop.f32.mrb[0].mxu0  ;;  %v173_v13 = vpop.f32.mrb[0].mxu1 }
 0x103   :  { %v394_v15 = vpop.f32.mrb[1].mxu0  ;;  %v174_v16 = vadd.f32 %v173_v13, %v118_v12  ;;  %v402_v17 = vpop.f32.mrb[1].mxu1 }
 0x104   :  { %v121_v18 = vpop.f32.mrb[2].mxu0  ;;  %v176_v19 = vpop.f32.mrb[2].mxu1 }
 0x105   :  { %v395_v20 = vpop.f32.mrb[3].mxu0  ;;  %v186_v21 = vadd.f32 %v363_v14, %v174_v16  ;;  %v403_v22 = vpop.f32.mrb[3].mxu1 }
 0x107   :  { %v187_v23 = vmax.f32 %v186_v21, 0.0 }
 0x109   :  { %v188_v24 = vpack.c.bf16 %v187_v23, %v187_v23 }
 0x10b   :  { %413 = vmatmul.mubr.msk.bf16.vlgmr.msra.gmra.mrb[4].mxu0 %vm228_vm2, %v188_v24 }
 0x1de   :  { %v266_v27 = vpop.f32.mrb[4].mxu0 }
 0x1df   :  { %v267_v28 = vadd.f32 %v364_v26, %v266_v27  ;;  %v414_v29 = vpop.f32.mrb[5].mxu0 }
 0x1e0   :  { %v269_v30 = vpop.f32.mrb[6].mxu0 }
 0x1e1   :  { %v272_v31 = vmax.f32 %v267_v28, 0.0  ;;  %v415_v32 = vpop.f32.mrb[7].mxu0 }
 0x1e3   :  { %v273_v33 = vpack.c.bf16 %v272_v31, %v272_v31 }
 0x1e5   :  { %421 = vmatmul.mubr.msk.bf16.vlgmr.msra.gmra.mrb[4].mxu1 %vm80_vm1, %v273_v33 }
 0x2b8   :  { %v334_v35 = vpop.f32.mrb[4].mxu1 }
 0x2b9   :  { %v335_v36 = vadd.f32 %v370_v34, %v334_v35  ;;  %v422_v37 = vpop.f32.mrb[5].mxu1 }
 0x2ba   :  { %v337_v38 = vpop.f32.mrb[6].mxu1 }
 0x2bb   :  { %340 = vst [vmem:[#allocation7] sm:$0xff] %v335_v36  ;;  %v423_v39 = vpop.f32.mrb[7].mxu1 }
 0x2bc   :  { %494 = shalt.err (!%p491_p6)
}
 0x2bd   :  { %s495_s8 = scalar_lea.hbm %s657_s9, 128 }
 0x2be   :  { %p496_p7 = scmp.ne.s32.totalorder %s657_s9, %s495_s8  ;;  %p499_p8 = scmp.lt.u32.totalorder %s495_s8, %s657_s9 }
 0x2c0   :  { %p501_p9 = pnand %p499_p8, %p496_p7 }
 0x2c2   :  { %504 = shalt.err (!%p501_p9)
}
 0x2c3   :  { %350 = dma.vmem_to_hbm [thread:$0]  %s348_s7, 128, %s657_s9, [#allocation4]  }
 0x2c4   :  { %509 = dma.done.wait [#allocation4], 128  }
 0x2c5   :  { %510 = vsyncadd [#allocation4], 4294967168 }
 0x2c6   :  { %354 = vsyncpa [#allocation3], 1 }
 0x2c7   :  { %355 = vsyncpa [#allocation6], 1 }
 0x2c8   :  { %356 = vsyncpa [#allocation4], 1 }

</bundles_post_ra>
